<compile_context>
chip_gen: v7x
topology: tpu7x:2x2x1
jax: 0.10.0
libtpu: 0.0.40
codegen_flags: <defaults>
</compile_context>

<pallas_src>
import functools

import jax
import jax.numpy as jnp
from jax.experimental import pallas as pl
from jax.experimental.pallas import tpu as pltpu

GAMMA = 2.0  # module default (pow specialised to d*d below)


def focal_loss_kernel(logits_ref, target_ref, out_ref, acc_ref, *, n_rows):
    c_axis = pl.program_id(0)          # core-split axis ("parallel")
    i = pl.program_id(1)               # row-tile axis ("arbitrary" reduction)
    inner = pl.num_programs(1)

    @pl.when(i == 0)
    def _():
        acc_ref[...] = jnp.zeros_like(acc_ref)

    x = logits_ref[...].astype(jnp.float32)        # (TM, C)
    t = target_ref[...]                            # (TM, 1) int32
    tm, c = x.shape

    # Numerically-stable log-softmax pieces; the only full-tile exp is the
    # logsumexp one.
    m = jnp.max(x, axis=-1, keepdims=True)                              # (TM,1)
    shifted = x - m
    lse = jnp.log(jnp.sum(jnp.exp(shifted), axis=-1, keepdims=True))    # (TM,1)

    # Shifted logit at the target class via a one-hot *select* (no int->float
    # convert, no full-tile multiply).
    class_ids = jax.lax.broadcasted_iota(jnp.int32, (tm, c), 1)
    s_t = jnp.sum(jnp.where(class_ids == t, shifted, 0.0),
                  axis=-1, keepdims=True)                               # (TM,1)

    lp_t = s_t - lse                    # log p_target      (TM,1)
    p_t = jnp.exp(lp_t)                 # per-row exp only
    d = 1.0 - p_t
    per_row = -(d * d) * lp_t           # gamma = 2 -> (1 - p)^2 * (-log p)

    # Mask rows past N (ragged tail block and the clamped redundant step of
    # the second core). Tail data is undefined, so a select is required to
    # kill potential NaN/Inf -- multiply-by-zero would not.
    row_ids = jax.lax.broadcasted_iota(jnp.int32, (tm, 1), 0)
    global_row = (c_axis * inner + i) * tm + row_ids
    per_row = jnp.where(global_row < n_rows, per_row, 0.0)

    acc_ref[...] = acc_ref[...] + jnp.sum(per_row)

    @pl.when(i == inner - 1)
    def _():
        # Per-core partial of the mean; wrapper sums the cores.
        out_ref[...] = jnp.broadcast_to(
            acc_ref[...] * (1.0 / float(n_rows)), out_ref.shape)


def _physical_vmem_bytes():
    try:
        return int(pltpu.get_tpu_info().vmem_capacity_bytes)
    except Exception:
        return 64 * 1024 * 1024        # conservative: v7x per-TensorCore VMEM


def focal_loss(logits, targets, *, tm_max=None):
    """logits: (N, C) float, targets: (N,) int -> scalar focal loss (mean)."""
    n, c = logits.shape
    assert targets.shape == (n,)

    itemsize = int(jnp.dtype(logits.dtype).itemsize)
    sublane = max(8, 32 // max(itemsize, 1))        # 8 f32 / 16 bf16 / 32 int8
    lane_c = max(128, ((c + 127) // 128) * 128)     # lane-padded class dim

    phys_vmem = _physical_vmem_bytes()
    if phys_vmem >= 128 * 1024 * 1024:              # v5e / v6e
        vmem_limit = 96 * 1024 * 1024
    else:                                           # v7x (64 MiB per TC)
        vmem_limit = max(32 * 1024 * 1024, (3 * phys_vmem) // 4)

    # Two double-buffered logits tiles + tiny targets/output + headroom.
    tile_budget = vmem_limit // 3
    budget_rows = max(sublane,
                      (tile_budget // (lane_c * itemsize)) // sublane * sublane)
    if tm_max is not None:                          # test hook
        budget_rows = min(budget_rows,
                          max(sublane, (tm_max // sublane) * sublane))
    tm = n if n <= budget_rows else budget_rows     # full-dim or 8/16/32-aligned

    n_tiles = pl.cdiv(n, tm)
    ncores = 2 if n_tiles >= 2 else 1   # v7x has 2 TCs; serial (harmless) on 1-TC
    inner = pl.cdiv(n_tiles, ncores)

    def row_block(cc, ii):
        # Clamp so the possibly-redundant last step of the second core maps to
        # a real block; that step is fully masked inside the kernel.
        return (jnp.minimum(cc * inner + ii, n_tiles - 1), 0)

    targets2d = targets.astype(jnp.int32).reshape(n, 1)
    kernel = functools.partial(focal_loss_kernel, n_rows=n)

    out = pl.pallas_call(
        kernel,
        out_shape=jax.ShapeDtypeStruct((ncores * 8, 128), jnp.float32),
        grid_spec=pltpu.PrefetchScalarGridSpec(
            num_scalar_prefetch=0,
            grid=(ncores, inner),
            in_specs=[
                pl.BlockSpec((tm, c), row_block),     # logits tile
                pl.BlockSpec((tm, 1), row_block),     # target tile
            ],
            out_specs=pl.BlockSpec((8, 128), lambda cc, ii: (cc, 0)),
            scratch_shapes=[pltpu.VMEM((1, 1), jnp.float32)],
        ),
        compiler_params=pltpu.CompilerParams(
            dimension_semantics=("parallel", "arbitrary"),
            vmem_limit_bytes=vmem_limit,
        ),
    )(logits, targets2d)

    # One partial per core lives at row c*8, lane 0 of its (8,128) block.
    return jnp.sum(out[0::8, 0])


if __name__ == "__main__":
    key = jax.random.PRNGKey(0)
    k1, k2 = jax.random.split(key)

    N, C = 20, 16
    logits = jax.random.normal(k1, (N, C), dtype=jnp.float32)
    targets = jax.random.randint(k2, (N,), 0, C, dtype=jnp.int32)

    # Pure-JAX reference of the module's math.
    log_prob = jax.nn.log_softmax(logits, axis=-1)
    prob = jnp.exp(log_prob)
    focal = ((1.0 - prob) ** GAMMA) * log_prob
    ref = -jnp.mean(focal[jnp.arange(N), targets])

    # Multi-tile path: tm=8 -> 3 row tiles -> grid (2, 2): exercises per-core
    # accumulation, the ragged tail block, and the clamped redundant step.
    loss_small = focal_loss(logits, targets, tm_max=8)
    # Default path: single resident tile (tm = N), grid (1, 1).
    loss_big = focal_loss(logits, targets)
    jax.block_until_ready((loss_small, loss_big))

    assert jnp.allclose(loss_small, ref, atol=1e-5, rtol=1e-5), (loss_small, ref)
    assert jnp.allclose(loss_big, ref, atol=1e-5, rtol=1e-5), (loss_big, ref)

    print("KERNEL_OK")
</pallas_src>

<mosaic_0001>
module attributes {stable_mosaic.version = 11 : i64} {
  func.func @focal_loss_kernel(%arg0: i32, %arg1: i32, %arg2: memref<8x16xf32, #tpu.memory_space<vmem>>, %arg3: memref<8x1xi32, #tpu.memory_space<vmem>>, %arg4: memref<8x128xf32, #tpu.memory_space<vmem>>, %arg5: memref<1x1xf32, #tpu.memory_space<vmem>>) attributes {dimension_semantics = [#tpu.dimension_semantics<parallel>, #tpu.dimension_semantics<arbitrary>], iteration_bounds = array<i64: 2, 2>, scalar_prefetch = 0 : i64, scratch_operands = 1 : i64, tpu.core_type = #tpu.core_type<tc>, window_params = [{transform_indices = @transform_0, window_bounds = array<i64: 8, 16>}, {transform_indices = @transform_1, window_bounds = array<i64: 8, 1>}, {transform_indices = @transform_2, window_bounds = array<i64: 8, 128>}]} {
    %c0_i32 = arith.constant 0 : i32
    %0 = arith.cmpi eq, %arg1, %c0_i32 : i32
    %1 = arith.extui %0 : i1 to i32
    %c0_i32_0 = arith.constant 0 : i32
    %2 = arith.cmpi ne, %1, %c0_i32_0 : i32
    scf.if %2 {
      %cst_16 = arith.constant 0.000000e+00 : f32
      %49 = vector.broadcast %cst_16 : f32 to vector<1x1xf32>
      %c0_17 = arith.constant 0 : index
      %c0_18 = arith.constant 0 : index
      %50 = vector.load %arg5[%c0_17, %c0_18] : memref<1x1xf32, #tpu.memory_space<vmem>>, vector<1x1xf32>
      tpu.vector_store %arg5[%c0_17, %c0_18], %49 {strides = array<i32>} : memref<1x1xf32, #tpu.memory_space<vmem>>, vector<1x1xf32>,
    } else {
    }
    %c0 = arith.constant 0 : index
    %c0_1 = arith.constant 0 : index
    %3 = vector.load %arg2[%c0, %c0_1] : memref<8x16xf32, #tpu.memory_space<vmem>>, vector<8x16xf32>
    %c0_2 = arith.constant 0 : index
    %c0_3 = arith.constant 0 : index
    %4 = vector.load %arg3[%c0_2, %c0_3] : memref<8x1xi32, #tpu.memory_space<vmem>>, vector<8x1xi32>
    %cst = arith.constant dense<0xFF800000> : vector<8xf32>
    %5 = vector.multi_reduction <maximumf>, %3, %cst [1] : vector<8x16xf32> to vector<8xf32>
    %6 = vector.shape_cast %5 : vector<8xf32> to vector<8x1xf32>
    %7 = vector.broadcast %6 : vector<8x1xf32> to vector<8x16xf32>
    %8 = arith.subf %3, %7 : vector<8x16xf32>
    %9 = math.exp %8 : vector<8x16xf32>
    %cst_4 = arith.constant dense<0.000000e+00> : vector<8xf32>
    %10 = vector.multi_reduction <add>, %9, %cst_4 [1] : vector<8x16xf32> to vector<8xf32>
    %11 = vector.shape_cast %10 : vector<8xf32> to vector<8x1xf32>
    %12 = math.log %11 : vector<8x1xf32>
    %13 = tpu.iota {dimensions = array<i32: 1>} : vector<8x16xi32>
    %14 = vector.broadcast %4 : vector<8x1xi32> to vector<8x16xi32>
    %15 = arith.cmpi eq, %13, %14 : vector<8x16xi32>
    %cst_5 = arith.constant 0.000000e+00 : f32
    %16 = vector.broadcast %cst_5 : f32 to vector<8x16xf32>
    %17 = arith.select %15, %8, %16 : vector<8x16xi1>, vector<8x16xf32>
    %cst_6 = arith.constant dense<0.000000e+00> : vector<8xf32>
    %18 = vector.multi_reduction <add>, %17, %cst_6 [1] : vector<8x16xf32> to vector<8xf32>
    %19 = vector.shape_cast %18 : vector<8xf32> to vector<8x1xf32>
    %20 = arith.subf %19, %12 : vector<8x1xf32>
    %21 = math.exp %20 : vector<8x1xf32>
    %cst_7 = arith.constant 1.000000e+00 : f32
    %22 = vector.broadcast %cst_7 : f32 to vector<8x1xf32>
    %23 = arith.subf %22, %21 : vector<8x1xf32>
    %24 = arith.mulf %23, %23 : vector<8x1xf32>
    %cst_8 = arith.constant 0.000000e+00 : f32
    %25 = vector.broadcast %cst_8 : f32 to vector<8x1xf32>
    %26 = arith.subf %25, %24 : vector<8x1xf32>
    %27 = arith.mulf %26, %20 : vector<8x1xf32>
    %28 = tpu.iota {dimensions = array<i32: 0>} : vector<8x1xi32>
    %c2_i32 = arith.constant 2 : i32
    %29 = arith.muli %arg0, %c2_i32 : i32
    %30 = arith.addi %29, %arg1 : i32
    %c8_i32 = arith.constant 8 : i32
    %31 = arith.muli %30, %c8_i32 : i32
    %32 = vector.broadcast %31 : i32 to vector<8x1xi32>
    %33 = arith.addi %32, %28 : vector<8x1xi32>
    %c20_i32 = arith.constant 20 : i32
    %34 = vector.broadcast %c20_i32 : i32 to vector<8x1xi32>
    %35 = arith.cmpi slt, %33, %34 : vector<8x1xi32>
    %cst_9 = arith.constant 0.000000e+00 : f32
    %36 = vector.broadcast %cst_9 : f32 to vector<8x1xf32>
    %37 = arith.select %35, %27, %36 : vector<8x1xi1>, vector<8x1xf32>
    %c0_10 = arith.constant 0 : index
    %c0_11 = arith.constant 0 : index
    %38 = vector.load %arg5[%c0_10, %c0_11] : memref<1x1xf32, #tpu.memory_space<vmem>>, vector<1x1xf32>
    %39 = vector.shape_cast %37 : vector<8x1xf32> to vector<1x8x1xf32>
    %cst_12 = arith.constant dense<0.000000e+00> : vector<1xf32>
    %40 = vector.multi_reduction <add>, %39, %cst_12 [1, 2] : vector<1x8x1xf32> to vector<1xf32>
    %41 = vector.shape_cast %40 : vector<1xf32> to vector<1x1x1xf32>
    %42 = vector.extract %41[0, 0, 0] : f32 from vector<1x1x1xf32>
    %43 = vector.broadcast %42 : f32 to vector<1x1xf32>
    %44 = arith.addf %38, %43 : vector<1x1xf32>
    %c0_13 = arith.constant 0 : index
    %c0_14 = arith.constant 0 : index
    %45 = vector.load %arg5[%c0_13, %c0_14] : memref<1x1xf32, #tpu.memory_space<vmem>>, vector<1x1xf32>
    tpu.vector_store %arg5[%c0_13, %c0_14], %44 {strides = array<i32>} : memref<1x1xf32, #tpu.memory_space<vmem>>, vector<1x1xf32>,
    %c1_i32 = arith.constant 1 : i32
    %46 = arith.cmpi eq, %arg1, %c1_i32 : i32
    %47 = arith.extui %46 : i1 to i32
    %c0_i32_15 = arith.constant 0 : i32
    %48 = arith.cmpi ne, %47, %c0_i32_15 : i32
    scf.if %48 {
      %c0_16 = arith.constant 0 : index
      %c0_17 = arith.constant 0 : index
      %49 = vector.load %arg5[%c0_16, %c0_17] : memref<1x1xf32, #tpu.memory_space<vmem>>, vector<1x1xf32>
      %cst_18 = arith.constant 5.000000e-02 : f32
      %50 = vector.broadcast %cst_18 : f32 to vector<1x1xf32>
      %51 = arith.mulf %49, %50 : vector<1x1xf32>
      %52 = vector.shape_cast %51 : vector<1x1xf32> to vector<1x1xf32>
      %53 = vector.broadcast %52 : vector<1x1xf32> to vector<8x128xf32>
      %c0_19 = arith.constant 0 : index
      %c0_20 = arith.constant 0 : index
      %54 = vector.load %arg4[%c0_19, %c0_20] : memref<8x128xf32, #tpu.memory_space<vmem>>, vector<8x128xf32>
      tpu.vector_store %arg4[%c0_19, %c0_20], %53 {strides = array<i32>} : memref<8x128xf32, #tpu.memory_space<vmem>>, vector<8x128xf32>,
    } else {
    }
    return
  }
  func.func @transform_0(%arg0: i32, %arg1: i32) -> (i32, i32) {
    %c2_i32 = arith.constant 2 : i32
    %0 = arith.muli %arg0, %c2_i32 : i32
    %1 = arith.addi %0, %arg1 : i32
    %c2_i32_0 = arith.constant 2 : i32
    %2 = arith.minsi %1, %c2_i32_0 : i32
    %c0_i32 = arith.constant 0 : i32
    %c0_i32_1 = arith.constant 0 : i32
    return %2, %c0_i32 : i32, i32
  }
  func.func @transform_1(%arg0: i32, %arg1: i32) -> (i32, i32) {
    %c2_i32 = arith.constant 2 : i32
    %0 = arith.muli %arg0, %c2_i32 : i32
    %1 = arith.addi %0, %arg1 : i32
    %c2_i32_0 = arith.constant 2 : i32
    %2 = arith.minsi %1, %c2_i32_0 : i32
    %c0_i32 = arith.constant 0 : i32
    %c0_i32_1 = arith.constant 0 : i32
    return %2, %c0_i32 : i32, i32
  }
  func.func @transform_2(%arg0: i32, %arg1: i32) -> (i32, i32) {
    %c0_i32 = arith.constant 0 : i32
    %c0_i32_0 = arith.constant 0 : i32
    return %arg0, %c0_i32 : i32, i32
  }
}

</mosaic_0001>

<bundles_post_ra>
// kernel: tpu_custom_call.1
= control target key start
LH: loop header
LB: loop body
LE: loop exit
PB: predicated region body
PF: predicated region fallthrough
CT: control target
= control target key end

     0   :  { %7 = vsyncpa [#allocation4], 0  ;;  %s775_s0 = inlined_call_operand.vmem [shape: f32[20,16], index: 0, kind: input, shape index: {}]   ;;  %s776_s1 = inlined_call_operand.vmem [shape: s32[20,1], index: 1, kind: input, shape index: {}]   ;;  %s777_s2 = inlined_call_operand.hbm [shape: f32[16,128], index: 2, kind: output, shape index: {}]  }
   0x1   :  { %9 = vsyncpa [#allocation4 + $0x1], 0  ;;  %s625_s9 = smov 0   ;;  %s627_s10 = smov 0  }
   0x2   :  { %s629_s11 = smov 0   ;;  %s631_s12 = smov 0  }
   0x3   :  { %s633_s13 = smov 0   ;;  %s635_s14 = smov 0  }
   0x4   :  { %s637_s15 = smov 0   ;;  %s639_s16 = smov 0  }
   0x5 LB: > { %s398_s17 = sadd.s32 4294967295, %s604_s16   ;;  %s399_s18 = sadd.s32 4294967294, %s604_s16   ;;  %s604_s16 = sphi %s639_s16, %s15_s16   ;;  %s600_s15 = sphi %s637_s15, %s786_s15   ;;  %s596_s14 = sphi %s635_s14, %s785_s14   ;;  %s592_s13 = sphi %s633_s13, %s784_s13   ;;  %s588_s12 = sphi %s631_s12, %s783_s12   ;;  %s584_s11 = sphi %s629_s11, %s782_s11   ;;  %s580_s10 = sphi %s627_s10, %s781_s10   ;;  %s576_s9 = sphi %s625_s9, %s780_s9  }
   0x6   : > { %s24_s19 = sadd.s32 1, %s596_s14  ;;  %s27_s20 = sadd.s32 1, %s600_s15 }
   0x7   : > { %p25_p0 = scmp.ge.s32.totalorder %s24_s19, 2  ;;  %p112_p1 = scmp.ne.s32.totalorder %s584_s11, %s580_s10 }
   0x8   : > { %p113_p2 = scmp.eq.s32.totalorder %s398_s17, 3  ;;  %p118_p4 = scmp.ne.s32.totalorder %s580_s10, %s576_s9 }
   0x9   : > { %s788_s19 = smov (%p25_p0, %s24_s19), 0  ;;  %s790_s20 = smov (!%p25_p0, %s27_s20), %s600_s15 }
   0xa   : > { %p674_p3 = por %p113_p2, %p112_p1  ;;  %p29_p5 = scmp.ge.s32.totalorder %s790_s20, 2 }
   0xb   : > { %p119_p6 = scmp.eq.s32.totalorder %s399_s18, 3  ;;  %p406_p7 = scmp.ge.s32.totalorder %s604_s16, 1 }
   0xc   : > { %p167_p8 = scmp.lt.s32.totalorder %s604_s16, 5  ;;  %s792_s20 = smov (%p29_p5, %s790_s20), 0 }
   0xd   : > { %p684_p9 = por %p119_p6, %p118_p4  ;;  %s99_s23 = ssub.s32 %s600_s15, %s792_s20 }
   0xe   : > { %p168_p10 = pnand %p406_p7, %p167_p8  ;;  %s102_s24 = sadd.s32 1, %s584_s11 }
   0xf   : > { %p100_p11 = scmp.eq.s32.totalorder %s99_s23, 0  ;;  %s197_s26 = sand.u32 (!%p168_p10), 1, %s580_s10  }
  0x10   : > { %171 = sbr.rel (%p168_p10) target bundleno = 743 (0x2e7), region = 28  ;;  %s408_s27 = sshll.u32 (!%p168_p10), %s592_s13, 1 }
  0x11   : > { %s692_s25 = scalar_select %p100_p11, %s584_s11, %s102_s24  }
  0x12   : > { %s698_s28 = sshll.u32 (!%p168_p10), %s197_s26, 3  ;;  %s701_s29 = sadd.s32 (!%p168_p10), %s588_s12, %s408_s27 }
  0x13   : > { %p202_p12 = scmp.lt.s32.totalorder (!%p168_p10), %s701_s29, 2  ;;  %s199_s18 = scalar_lea.vmem (!%p168_p10), [#allocation3], %s698_s28 }
  0x14   : > { %p418_p13 = scmp.ne.s32.totalorder (!%p168_p10), %s588_s12, 0 }
  0x17   : > { %s203_s30 = scalar_select %p202_p12, %s701_s29, 2 }
  0x18   : > { %227 = sbr.rel (%p418_p13) target bundleno = 31 (0x1f), region = 32  ;;  %vm228_vm0 = vcmask (!%p418_p13), 0   ;;  %v606_v0 = vmov (!%p418_p13), 0.0  }
  0x19   : > { %s794_s30 = smov (!%p202_p12, %s203_s30), 2  ;;  %229 = vst.msk [vmem:[#allocation2] sm:$0x1] (!%p418_p13), %vm228_vm0, %v606_v0 }
  0x1a   : > { %s412_s3 = sshll.u32 %s794_s30, 3 }
  0x1b   : > { %s207_s6 = scalar_lea.vmem %s775_s0, %s412_s3  ;;  %s219_s17 = scalar_lea.vmem %s776_s1, %s412_s3 }
  0x1f PF: > { %v230_v1 = vld [vmem:[%s207_s6] sm:$0xff]  ;;  %vm232_vm1 = vcmask 130048   ;;  %v607_v3 = vmov 0   ;;  %v244_v8 = vlaneseq  ;;  %s420_s23 = sshll.u32 %s701_s29, 3  ;;  %vm271_vm4 = vcmask 7168   ;;  %p421_p0 = scmp.ne.s32.totalorder %s588_s12, 1 }
  0x20   : > { %v233_v2 = vsel %vm232_vm1, %v230_v1, -inf  ;;  %502 = vset.pattern.permute.xlu0 %v607_v3  ;;  %v231_v4 = vld [vmem:[%s219_s17] sm:$0xff]  ;;  %v266_v22 = vstv %s420_s23  ;;  %vm284_vm5 = vcmask 0   ;;  %v608_v43 = vmov (!%p421_p0), 0  }
  0x21   : > { %234 = vmax.xlane.f32.xlu0 %v233_v2  ;;  %v245_v9 = vand.u32 127, %v244_v8  ;;  %v262_v21 = vshrl.u32 %v244_v8, 7  ;;  %v270_v38 = vld [vmem:[#allocation2] sm:$0x1] }
  0x23   : > { %v267_v25 = vadd.s32 %v266_v22, %v262_v21  ;;  %v295_v42 = vsub.s32 (!%p421_p0), 0, %v262_v21 }
  0x25   : > { %vm268_vm3 = vcmp.lt.s32.totalorder %v267_v25, 20 }
  0x37   : > { %247 = vperm.xlu0 %502, %v231_v4  }
  0x3b   : > { %509 = vset.pattern.permute.xlu0 (!%p421_p0), %v608_v43 }
  0xae   : > { %v235_v5 = vpop.xlane.xlu0 %234 }
  0xaf   : > { %v236_v6 = vsub.f32 %v230_v1, %v235_v5 }
  0xb1   : > { %v237_v7 = vmul.f32 1.442695, %v236_v6 }
  0xb3   : > { %503 = vpow2.f32 %v237_v7 }
  0xb6   : > { %v248_v10 = vpop.permute.xlu0 %247 }
  0xb7   : > { %vm249_vm2 = vcmp.eq.s32.totalorder %v245_v9, %v248_v10 }
  0xb8   : > { %v250_v13 = vsel %vm249_vm2, %v236_v6, 0.0 }
  0xb9   : > { %v251_v14 = vsel %vm232_vm1, %v250_v13, 0.0 }
  0xbd   : > { %v504_v11 = vpop.eup %503 }
  0xbe   : > { %v239_v12 = vsel %vm232_vm1, %v504_v11, 0.0 }
  0xbf   : > { %240 = vadd.xlane.f32.xlu1 %v239_v12 }
  0xc3   : > { %252 = vadd.xlane.f32.xlu1 %v251_v14 }
 0x14c   : > { %v241_v15 = vpop.xlane.xlu1 %240 }
 0x14d   : > { %505 = vlog2.f32 %v241_v15 }
 0x150   : > { %v253_v18 = vpop.xlane.xlu1 %252 }
 0x157   : > { %v506_v16 = vpop.eup %505 }
 0x158   : > { %v243_v17 = vmul.f32 0.6931472, %v506_v16 }
 0x15a   : > { %v254_v19 = vsub.f32 %v253_v18, %v243_v17 }
 0x15c   : > { %v255_v20 = vmul.f32 1.442695, %v254_v19 }
 0x15e   : > { %507 = vpow2.f32 %v255_v20 }
 0x168   : > { %v508_v23 = vpop.eup %507 }
 0x169   : > { %v257_v24 = vsub.f32 1.0, %v508_v23 }
 0x16b   : > { %v258_v26 = vmul.f32 %v257_v24, %v257_v24 }
 0x16d   : > { %v259_v27 = vsub.f32 0.0, %v258_v26 }
 0x16f   : > { %v260_v28 = vmul.f32 %v259_v27, %v254_v19 }
 0x171   : > { %v269_v29 = vsel %vm268_vm3, %v260_v28, 0.0 }
 0x172   : > { %v272_v30 = vsel %vm271_vm4, %v269_v29, 0.0 }
 0x173   : > { %273 = vadd.xlane.f32.xlu1 %v272_v30 }
 0x200   : > { %v274_v31 = vpop.xlane.xlu1 %273 }
 0x201   : > { %v275_v32 = vrot.slane %v274_v31, 4 }
 0x203   : > { %v276_v33 = vadd.f32 %v275_v32, %v274_v31 }
 0x205   : > { %v277_v34 = vrot.slane %v276_v33, 2 }
 0x207   : > { %v278_v35 = vadd.f32 %v277_v34, %v276_v33 }
 0x209   : > { %v279_v36 = vrot.slane %v278_v35, 1 }
 0x20b   : > { %v280_v37 = vadd.f32 %v279_v36, %v278_v35 }
 0x20d   : > { %426 = vpush %v280_v37 }
 0x23c   : > { %289 = sbr.rel (%p421_p0) target bundleno = 719 (0x2cf), region = 36 }
 0x23e   : > { %s427_s24 = spop %426 }
 0x23f   : > { %v282_v39 = vstv %s427_s24 }
 0x240   : > { %v283_v40 = vadd.f32 %v282_v39, %v270_v38 }
 0x242   : > { %285 = vst.msk [vmem:[#allocation2] sm:$0x1] %vm284_vm5, %v283_v40 }
 0x249   : > { %v290_v41 = vld [vmem:[#allocation2] sm:$0x1] }
 0x24a   : > { %v291_v44 = vmul.f32 0.05, %v290_v41 }
 0x24c   : > { %v296_v45 = vrot.slane %v291_v44, %v295_v42 }
 0x24e   : > { %298 = vperm.xlu0 %509, %v296_v45  }
 0x2cd   : > { %v299_v46 = vpop.permute.xlu0 %298 }
 0x2ce   : > { %301 = vst [vmem:[%s199_s18] sm:$0xff] %v299_v46 }
 0x2cf PF: > { %s423_s27 = sshll.u32 %s592_s13, 7  ;;  %s316_s3 = sshll.u32 %s199_s18, 4  ;;  %s317_s3 = int_to_ptr.vmem [resolvable:$true] %s316_s3 }
 0x2d0   : > { %s724_s30 = scalar_lea.hbm %s777_s2, %s423_s27  ;;  %s303_s4 = scalar_lea.sflag [#allocation4], %s197_s26 }
 0x2d1   : > { %s510_s5 = scalar_lea.vmem %s317_s3, 128  ;;  %s609_s6 = smov [#allocation3]  }
 0x2d2   : > { %p511_p1 = scmp.ne.s32.totalorder %s317_s3, %s510_s5  ;;  %s514_s7 = sshll.u32 %s609_s6, 4  ;;  %s515_s7 = int_to_ptr.vmem [resolvable:$false] %s514_s7 }
 0x2d3   : > { %s516_s8 = scalar_lea.vmem %s515_s7, 256  ;;  %p517_p5 = scmp.lt.s32.totalorder %s317_s3, %s515_s7 }
 0x2d4   : > { %p512_p2 = pnand %p511_p1, %p674_p3  ;;  %p518_p6 = scmp.lt.s32.totalorder %s516_s8, %s510_s5 }
 0x2d6   : > { %p513_p4 = pneg %p512_p2  ;;  %p519_p7 = por %p518_p6, %p517_p5 }
 0x2d8   : > { %p520_p8 = pnand %p519_p7, %p513_p4 }
 0x2da   : > { %523 = shalt.err (!%p520_p8)
}
 0x2db   : > { %s524_s13 = scalar_lea.hbm %s724_s30, 128  ;;  %s528_s17 = scalar_lea.hbm %s777_s2, 256 }
 0x2dc   : > { %p525_p10 = scmp.ne.s32.totalorder %s724_s30, %s524_s13  ;;  %p529_p13 = scmp.lt.u32.totalorder %s724_s30, %s777_s2 }
 0x2dd   : > { %p530_p0 = scmp.lt.u32.totalorder %s528_s17, %s524_s13  ;;  %p532_p2 = scmp.lt.u32.totalorder %s524_s13, %s724_s30 }
 0x2de   : > { %p526_p11 = pnand %p525_p10, %p674_p3 }
 0x2df   : > { %p531_p1 = por %p530_p0, %p529_p13 }
 0x2e0   : > { %p527_p12 = pneg %p526_p11 }
 0x2e1   : > { %p533_p4 = por %p532_p2, %p531_p1 }
 0x2e3   : > { %p534_p5 = pnand %p533_p4, %p527_p12 }
 0x2e5   : > { %537 = shalt.err (!%p534_p5)
}
 0x2e6   : > { %428 = dma.vmem_to_hbm [thread:$0]  (%p674_p3), %s317_s3, 128, %s724_s30, %s303_s4  }
 0x2e7 PF: > { %p434_p6 = scmp.ge.s32.totalorder %s604_s16, 2  ;;  %s328_s24 = sand.u32 1, %s576_s9  }
 0x2e8   : > { %s329_s27 = scalar_lea.sflag [#allocation4], %s328_s24 }
 0x2e9   : > { %p431_p7 = pnand %p434_p6, %p684_p9 }
 0x2eb   : > { %571 = dma.done.wait (!%p431_p7), %s329_s27, 128  }
 0x2ec   : > { %573 = vsyncadd (!%p431_p7), %s329_s27, 4294967168  ;;  %s15_s16 = sadd.s32 1, %s604_s16   ;;  %s780_s9 = smov %s580_s10 }
 0x2ed   : > { %p12_p8 = scmp.ge.s32.totalorder %s15_s16, 6   ;;  %s781_s10 = smov %s584_s11 }
 0x2ee   : > { %s782_s11 = smov %s692_s25  ;;  %s783_s12 = smov %s596_s14 }
 0x2ef   : > { %s784_s13 = smov %s600_s15  ;;  %s785_s14 = smov %s788_s19 }
 0x2f0   : > { %s786_s15 = smov %s792_s20  ;;  %14 = sbr.rel (!%p12_p8) target bundleno = 5 (0x5), region = 74 }
 0x2f7   :  { %334 = vsyncpa [#allocation4], 1 }
 0x2f8   :  { %336 = vsyncpa [#allocation4 + $0x1], 1 }

</bundles_post_ra>
